<compile_context>
chip_gen: v7x
topology: tpu7x:2x2x1
jax: 0.10.0
libtpu: 0.0.40
codegen_flags: <defaults>
</compile_context>

<pallas_src>
import jax
import jax.numpy as jnp
from jax.experimental import pallas as pl
from jax.experimental.pallas import tpu as pltpu


# --------------------------------------------------------------------------
# helpers
# --------------------------------------------------------------------------
def _pick_tile(n, max_tile=1024):
    """Largest multiple of 128 that divides n and is <= max_tile; else full n."""
    if n % 128 != 0:
        return n
    best = 128
    t = 128
    lim = min(n, max_tile)
    while t <= lim:
        if n % t == 0:
            best = t
        t += 128
    return best


def _l2norm(t):
    # F.normalize(t, dim=1): divide by the channel L2 norm clamped at 1e-12.
    n = jnp.sqrt(jnp.sum(t * t, axis=1, keepdims=True))
    return t / jnp.maximum(n, 1e-12)


def _dual_prune(q, k, v, hc, wc, top_k):
    """Dual-pruned key/value selection (plain JAX: top_k + gather)."""
    h_k = top_k if top_k > 0 else int(hc ** 0.5)
    w_k = top_k if top_k > 0 else int(wc ** 0.5)
    need_h = h_k < hc
    need_w = w_k < wc
    if not (need_h or need_w):
        return k, v
    bh, dh = k.shape[0], k.shape[1]
    k_abs = jnp.abs(k)                       # computed BEFORE any selection (as in torch)
    q_probe = jnp.sum(q, axis=(2, 3))        # (bh, dh)
    if need_h:
        k_height = jnp.sum(k_abs, axis=3)    # (bh, dh, hc)
        score_r = jnp.einsum("bc,bch->bh", q_probe, k_height)
        top_h = jax.lax.top_k(score_r, h_k)[1]
        idx = jnp.broadcast_to(top_h[:, None, :, None], (bh, dh, h_k, k.shape[3]))
        k = jnp.take_along_axis(k, idx, axis=2)
        v = jnp.take_along_axis(v, idx, axis=2)
    if need_w:
        k_width = jnp.sum(k_abs, axis=2)     # (bh, dh, wc)  (uses un-pruned k_abs)
        score_c = jnp.einsum("bc,bcw->bw", q_probe, k_width)
        top_w = jax.lax.top_k(score_c, w_k)[1]
        idx = jnp.broadcast_to(top_w[:, None, None, :], (bh, dh, k.shape[2], w_k))
        k = jnp.take_along_axis(k, idx, axis=3)
        v = jnp.take_along_axis(v, idx, axis=3)
    return k, v


# --------------------------------------------------------------------------
# Pallas kernel 1: fused ChanLayerNorm2D + 1x1 conv
# --------------------------------------------------------------------------
def fused_chan_norm_conv1x1(x, norm_g, norm_b, w, *, eps=1e-5):
    """x: (B, C, N); norm_g/norm_b: (C, 1); w: (Cout, C) -> (B, Cout, N)."""
    B, C, N = x.shape
    Cout = w.shape[0]
    TN = _pick_tile(N)

    def kernel(x_ref, g_ref, b_ref, w_ref, o_ref):
        xv = x_ref[...].astype(jnp.float32)                  # (C, TN)
        inv_c = 1.0 / xv.shape[0]
        sx = jnp.sum(xv, axis=0, keepdims=True)              # (1, TN)
        sxx = jnp.sum(xv * xv, axis=0, keepdims=True)        # (1, TN)
        mean = sx * inv_c
        var = sxx * inv_c - mean * mean                      # biased variance
        inv = jax.lax.rsqrt(var + eps)                       # EUP rsqrt (eps inside sqrt, 2D variant)
        xn = (xv - mean) * inv * g_ref[...].astype(jnp.float32) \
             + b_ref[...].astype(jnp.float32)                # (C, TN)
        o_ref[...] = jnp.dot(w_ref[...].astype(jnp.float32), xn,
                             preferred_element_type=jnp.float32).astype(o_ref.dtype)

    return pl.pallas_call(
        kernel,
        out_shape=jax.ShapeDtypeStruct((B, Cout, N), x.dtype),
        grid_spec=pltpu.PrefetchScalarGridSpec(
            num_scalar_prefetch=0,
            grid=(B, N // TN),
            in_specs=[
                pl.BlockSpec((None, C, TN), lambda bi, ni: (bi, 0, ni)),
                pl.BlockSpec((C, 1), lambda bi, ni: (0, 0)),
                pl.BlockSpec((C, 1), lambda bi, ni: (0, 0)),
                pl.BlockSpec((Cout, C), lambda bi, ni: (0, 0)),
            ],
            out_specs=pl.BlockSpec((None, Cout, TN), lambda bi, ni: (bi, 0, ni)),
        ),
        compiler_params=pltpu.CompilerParams(
            dimension_semantics=("parallel", "parallel"),
        ),
    )(x, norm_g, norm_b, w)


# --------------------------------------------------------------------------
# Pallas kernel 2: scaled-dot-product attention (per batch*head, q tiled)
# --------------------------------------------------------------------------
def attention(q, k, v):
    """q: (BH, Lq, D); k, v: (BH, Lk, D) -> softmax(q k^T / sqrt(D)) v."""
    BH, Lq, D = q.shape
    Lk = k.shape[1]
    TQ = _pick_tile(Lq, max_tile=512)
    scale = 1.0 / (D ** 0.5)

    def kernel(q_ref, k_ref, v_ref, o_ref):
        qv = q_ref[...].astype(jnp.float32)                  # (TQ, D)
        kv = k_ref[...].astype(jnp.float32)                  # (Lk, D)
        vv = v_ref[...].astype(jnp.float32)                  # (Lk, D)
        s = jax.lax.dot_general(qv, kv, (((1,), (1,)), ((), ())),
                                preferred_element_type=jnp.float32) * scale  # (TQ, Lk)
        m = jnp.max(s, axis=-1, keepdims=True)
        p = jnp.exp(s - m)
        denom = jnp.sum(p, axis=-1, keepdims=True)
        o = jnp.dot(p, vv, preferred_element_type=jnp.float32) \
            * pl.reciprocal(denom, approx=False)
        o_ref[...] = o.astype(o_ref.dtype)

    return pl.pallas_call(
        kernel,
        out_shape=jax.ShapeDtypeStruct((BH, Lq, D), q.dtype),
        grid_spec=pltpu.PrefetchScalarGridSpec(
            num_scalar_prefetch=0,
            grid=(BH, Lq // TQ),
            in_specs=[
                pl.BlockSpec((None, TQ, D), lambda bi, qi: (bi, qi, 0)),
                pl.BlockSpec((None, Lk, D), lambda bi, qi: (bi, 0, 0)),
                pl.BlockSpec((None, Lk, D), lambda bi, qi: (bi, 0, 0)),
            ],
            out_specs=pl.BlockSpec((None, TQ, D), lambda bi, qi: (bi, qi, 0)),
        ),
        compiler_params=pltpu.CompilerParams(
            dimension_semantics=("parallel", "parallel"),
        ),
    )(q, k, v)


# --------------------------------------------------------------------------
# Pallas kernel 3: fused to_out conv + out_norm + gamma*out + residual
# --------------------------------------------------------------------------
def fused_out_conv_norm_residual(x, w, norm_g, norm_b, gamma, res, *, eps=1e-5):
    """x: (B, Cin, N); w: (Cout, Cin); norm_g/b: (Cout, 1); gamma: (1, 1);
    res: (B, Cout, N)  ->  gamma * out_norm(w @ x) + res."""
    B, Cin, N = x.shape
    Cout = w.shape[0]
    TN = _pick_tile(N)

    def kernel(x_ref, w_ref, g_ref, b_ref, gm_ref, r_ref, o_ref):
        xv = x_ref[...].astype(jnp.float32)                  # (Cin, TN)
        y = jnp.dot(w_ref[...].astype(jnp.float32), xv,
                    preferred_element_type=jnp.float32)      # (Cout, TN)
        inv_c = 1.0 / y.shape[0]
        sx = jnp.sum(y, axis=0, keepdims=True)
        sxx = jnp.sum(y * y, axis=0, keepdims=True)
        mean = sx * inv_c
        var = sxx * inv_c - mean * mean
        inv = jax.lax.rsqrt(var + eps)
        yn = (y - mean) * inv * g_ref[...].astype(jnp.float32) \
             + b_ref[...].astype(jnp.float32)
        o_ref[...] = (gm_ref[...].astype(jnp.float32) * yn
                      + r_ref[...].astype(jnp.float32)).astype(o_ref.dtype)

    return pl.pallas_call(
        kernel,
        out_shape=jax.ShapeDtypeStruct((B, Cout, N), res.dtype),
        grid_spec=pltpu.PrefetchScalarGridSpec(
            num_scalar_prefetch=0,
            grid=(B, N // TN),
            in_specs=[
                pl.BlockSpec((None, Cin, TN), lambda bi, ni: (bi, 0, ni)),
                pl.BlockSpec((Cout, Cin), lambda bi, ni: (0, 0)),
                pl.BlockSpec((Cout, 1), lambda bi, ni: (0, 0)),
                pl.BlockSpec((Cout, 1), lambda bi, ni: (0, 0)),
                pl.BlockSpec((1, 1), lambda bi, ni: (0, 0)),
                pl.BlockSpec((None, Cout, TN), lambda bi, ni: (bi, 0, ni)),
            ],
            out_specs=pl.BlockSpec((None, Cout, TN), lambda bi, ni: (bi, 0, ni)),
        ),
        compiler_params=pltpu.CompilerParams(
            dimension_semantics=("parallel", "parallel"),
        ),
    )(x, w, norm_g, norm_b, gamma, res)


# --------------------------------------------------------------------------
# DPCA2D / DPCABlock forward
# --------------------------------------------------------------------------
def dpca2d_forward(query_source, context, params, *, heads, dim_head, top_k=-1):
    b, c, hq, wq = query_source.shape
    _, _, hc, wc = context.shape
    inner = heads * dim_head
    nq, nc = hq * wq, hc * wc

    qs_flat = query_source.reshape(b, c, nq)
    ctx_flat = context.reshape(b, c, nc)

    # fused ChanLayerNorm2D + 1x1 conv
    kv = fused_chan_norm_conv1x1(
        ctx_flat, params["ctx_g"].reshape(c, 1), params["ctx_b"].reshape(c, 1),
        params["w_kv"].reshape(2 * inner, c))
    q = fused_chan_norm_conv1x1(
        qs_flat, params["qs_g"].reshape(c, 1), params["qs_b"].reshape(c, 1),
        params["w_q"].reshape(inner, c))
    k, v = kv[:, :inner], kv[:, inner:]

    # head fold + l2norm + dual pruning (plain JAX glue)
    def fold(t, hh, ww):
        return t.reshape(b, heads, dim_head, hh, ww).reshape(b * heads, dim_head, hh, ww)

    qh = _l2norm(fold(q, hq, wq))
    kh = _l2norm(fold(k, hc, wc))
    vh = fold(v, hc, wc)
    kh, vh = _dual_prune(qh, kh, vh, hc, wc, top_k)

    bh = b * heads
    lk = kh.shape[2] * kh.shape[3]
    qf = qh.reshape(bh, dim_head, nq).transpose(0, 2, 1)
    kf = kh.reshape(bh, dim_head, lk).transpose(0, 2, 1)
    vf = vh.reshape(bh, dim_head, lk).transpose(0, 2, 1)

    # Pallas attention
    o = attention(qf, kf, vf)                                       # (bh, nq, dim_head)
    o = o.reshape(b, heads, hq, wq, dim_head).transpose(0, 1, 4, 2, 3)
    o = o.reshape(b, inner, nq)

    # fused to_out conv + out_norm + gamma*out + residual
    out = fused_out_conv_norm_residual(
        o, params["w_out"].reshape(c, inner),
        params["out_g"].reshape(c, 1), params["out_b"].reshape(c, 1),
        params["gamma"].reshape(1, 1), qs_flat)
    return out.reshape(b, c, hq, wq)


def dpca_block_forward(query_source, context, params, *, heads, dim_head, top_k=-1):
    attn = dpca2d_forward(query_source, context, params,
                          heads=heads, dim_head=dim_head, top_k=top_k)
    # TODO(synk): DPCABlock.mlp (ResidualBlock) is not defined in the provided source, so it is not applied here.
    return attn


# --------------------------------------------------------------------------
# pure-JAX reference (mirrors the PyTorch forward)
# --------------------------------------------------------------------------
def _reference_dpca2d(query_source, context, params, *, heads, dim_head, top_k=-1):
    eps = 1e-5
    hi = jax.lax.Precision.HIGHEST

    def norm(x, g, bb):
        mean = jnp.mean(x, axis=1, keepdims=True)
        var = jnp.mean((x - mean) ** 2, axis=1, keepdims=True)
        return (x - mean) / jnp.sqrt(var + eps) * g + bb

    b, c, hq, wq = query_source.shape
    _, _, hc, wc = context.shape
    inner = heads * dim_head
    ctx_n = norm(context, params["ctx_g"], params["ctx_b"])
    qs_n = norm(query_source, params["qs_g"], params["qs_b"])
    kv = jnp.einsum("oc,bchw->bohw", params["w_kv"].reshape(2 * inner, c), ctx_n, precision=hi)
    k, v = kv[:, :inner], kv[:, inner:]
    q = jnp.einsum("oc,bchw->bohw", params["w_q"].reshape(inner, c), qs_n, precision=hi)

    def fold(t):
        bb, _, hh, ww = t.shape
        return t.reshape(bb, heads, dim_head, hh, ww).reshape(bb * heads, dim_head, hh, ww)

    q, k, v = fold(q), fold(k), fold(v)
    q, k = _l2norm(q), _l2norm(k)
    k, v = _dual_prune(q, k, v, hc, wc, top_k)

    bh = b * heads
    lk = k.shape[2] * k.shape[3]
    qf = q.reshape(bh, dim_head, hq * wq).transpose(0, 2, 1)
    kf = k.reshape(bh, dim_head, lk).transpose(0, 2, 1)
    vf = v.reshape(bh, dim_head, lk).transpose(0, 2, 1)
    s = jnp.einsum("bqd,bkd->bqk", qf, kf, precision=hi) / jnp.sqrt(jnp.float32(dim_head))
    a = jax.nn.softmax(s, axis=-1)
    o = jnp.einsum("bqk,bkd->bqd", a, vf, precision=hi)
    o = o.reshape(b, heads, hq, wq, dim_head).transpose(0, 1, 4, 2, 3).reshape(b, inner, hq, wq)
    o = jnp.einsum("oc,bchw->bohw", params["w_out"].reshape(c, inner), o, precision=hi)
    o = norm(o, params["out_g"], params["out_b"])
    return params["gamma"].reshape(()) * o + query_source


# --------------------------------------------------------------------------
if __name__ == "__main__":
    key = jax.random.PRNGKey(0)
    ks = jax.random.split(key, 5)

    B, dim, heads = 2, 16, 4
    dim_head = dim // heads           # 4
    inner = heads * dim_head          # 16
    Hq = Wq = 8                       # query spatial  -> Lq = 64
    Hc = Wc = 16                      # context spatial -> Lc = 256, top_k=4 per axis

    query_source = jax.random.normal(ks[0], (B, dim, Hq, Wq), jnp.float32)
    context = jax.random.normal(ks[1], (B, dim, Hc, Wc), jnp.float32)

    params = {
        "ctx_g": jnp.ones((1, dim, 1, 1), jnp.float32),
        "ctx_b": jnp.zeros((1, dim, 1, 1), jnp.float32),
        "qs_g": jnp.ones((1, dim, 1, 1), jnp.float32),
        "qs_b": jnp.zeros((1, dim, 1, 1), jnp.float32),
        "out_g": jnp.ones((1, dim, 1, 1), jnp.float32),
        "out_b": jnp.zeros((1, dim, 1, 1), jnp.float32),
        "w_kv": jax.random.normal(ks[2], (2 * inner, dim, 1, 1), jnp.float32) / jnp.sqrt(dim),
        "w_q": jax.random.normal(ks[3], (inner, dim, 1, 1), jnp.float32) / jnp.sqrt(dim),
        "w_out": jax.random.normal(ks[4], (dim, inner, 1, 1), jnp.float32) / jnp.sqrt(inner),
        # PyTorch init is zeros(1); a nonzero value is used so the test exercises the full path.
        "gamma": jnp.full((1,), 0.5, jnp.float32),
    }

    out = dpca_block_forward(query_source, context, params,
                             heads=heads, dim_head=dim_head, top_k=-1)
    out = jax.block_until_ready(out)

    ref = _reference_dpca2d(query_source, context, params,
                            heads=heads, dim_head=dim_head, top_k=-1)
    assert out.shape == query_source.shape
    max_diff = float(jnp.max(jnp.abs(out - ref)))
    assert jnp.allclose(out, ref, atol=2e-3, rtol=2e-3), f"max abs diff {max_diff}"

    print("KERNEL_OK")
</pallas_src>

<mosaic_0001>
module attributes {stable_mosaic.version = 11 : i64} {
  func.func @kernel(%arg0: i32, %arg1: i32, %arg2: memref<1x16x256xf32, #tpu.memory_space<vmem>>, %arg3: memref<16x1xf32, #tpu.memory_space<vmem>>, %arg4: memref<16x1xf32, #tpu.memory_space<vmem>>, %arg5: memref<32x16xf32, #tpu.memory_space<vmem>>, %arg6: memref<1x32x256xf32, #tpu.memory_space<vmem>>) attributes {dimension_semantics = [#tpu.dimension_semantics<parallel>, #tpu.dimension_semantics<parallel>], iteration_bounds = array<i64: 2, 1>, scalar_prefetch = 0 : i64, scratch_operands = 0 : i64, tpu.core_type = #tpu.core_type<tc>, window_params = [{transform_indices = @transform_0, window_bounds = array<i64: 1, 16, 256>}, {pipeline_mode = #tpu.pipeline_mode<synchronous>, transform_indices = @transform_1, window_bounds = array<i64: 16, 1>}, {pipeline_mode = #tpu.pipeline_mode<synchronous>, transform_indices = @transform_2, window_bounds = array<i64: 16, 1>}, {pipeline_mode = #tpu.pipeline_mode<synchronous>, transform_indices = @transform_3, window_bounds = array<i64: 32, 16>}, {transform_indices = @transform_4, window_bounds = array<i64: 1, 32, 256>}]} {
    %c0 = arith.constant 0 : index
    %c0_0 = arith.constant 0 : index
    %c0_1 = arith.constant 0 : index
    %0 = vector.load %arg2[%c0, %c0_0, %c0_1] : memref<1x16x256xf32, #tpu.memory_space<vmem>>, vector<1x16x256xf32>
    %1 = vector.shape_cast %0 : vector<1x16x256xf32> to vector<16x256xf32>
    %cst = arith.constant dense<0.000000e+00> : vector<256xf32>
    %2 = vector.multi_reduction <add>, %1, %cst [0] : vector<16x256xf32> to vector<256xf32>
    %3 = vector.shape_cast %2 : vector<256xf32> to vector<1x256xf32>
    %4 = arith.mulf %1, %1 : vector<16x256xf32>
    %cst_2 = arith.constant dense<0.000000e+00> : vector<256xf32>
    %5 = vector.multi_reduction <add>, %4, %cst_2 [0] : vector<16x256xf32> to vector<256xf32>
    %6 = vector.shape_cast %5 : vector<256xf32> to vector<1x256xf32>
    %cst_3 = arith.constant 6.250000e-02 : f32
    %7 = vector.broadcast %cst_3 : f32 to vector<1x256xf32>
    %8 = arith.mulf %3, %7 : vector<1x256xf32>
    %cst_4 = arith.constant 6.250000e-02 : f32
    %9 = vector.broadcast %cst_4 : f32 to vector<1x256xf32>
    %10 = arith.mulf %6, %9 : vector<1x256xf32>
    %11 = arith.mulf %8, %8 : vector<1x256xf32>
    %12 = arith.subf %10, %11 : vector<1x256xf32>
    %cst_5 = arith.constant 9.99999974E-6 : f32
    %13 = vector.broadcast %cst_5 : f32 to vector<1x256xf32>
    %14 = arith.addf %12, %13 : vector<1x256xf32>
    %15 = math.rsqrt %14 : vector<1x256xf32>
    %16 = vector.broadcast %8 : vector<1x256xf32> to vector<16x256xf32>
    %17 = arith.subf %1, %16 : vector<16x256xf32>
    %18 = vector.broadcast %15 : vector<1x256xf32> to vector<16x256xf32>
    %19 = arith.mulf %17, %18 : vector<16x256xf32>
    %c0_6 = arith.constant 0 : index
    %c0_7 = arith.constant 0 : index
    %20 = vector.load %arg3[%c0_6, %c0_7] : memref<16x1xf32, #tpu.memory_space<vmem>>, vector<16x1xf32>
    %21 = vector.broadcast %20 : vector<16x1xf32> to vector<16x256xf32>
    %22 = arith.mulf %19, %21 : vector<16x256xf32>
    %c0_8 = arith.constant 0 : index
    %c0_9 = arith.constant 0 : index
    %23 = vector.load %arg4[%c0_8, %c0_9] : memref<16x1xf32, #tpu.memory_space<vmem>>, vector<16x1xf32>
    %24 = vector.broadcast %23 : vector<16x1xf32> to vector<16x256xf32>
    %25 = arith.addf %22, %24 : vector<16x256xf32>
    %c0_10 = arith.constant 0 : index
    %c0_11 = arith.constant 0 : index
    %26 = vector.load %arg5[%c0_10, %c0_11] : memref<32x16xf32, #tpu.memory_space<vmem>>, vector<32x16xf32>
    %cst_12 = arith.constant dense<0.000000e+00> : vector<32x256xf32>
    %27 = tpu.matmul %26, %25, %cst_12 {dimension_numbers = #tpu.dot_dimension_numbers<[1], [0], [0], [1], [0, 0, 1, 1], [], []>} : vector<32x16xf32>, vector<16x256xf32>, vector<32x256xf32> -> vector<32x256xf32>
    %c0_13 = arith.constant 0 : index
    %c0_14 = arith.constant 0 : index
    %c0_15 = arith.constant 0 : index
    %28 = vector.load %arg6[%c0_13, %c0_14, %c0_15] : memref<1x32x256xf32, #tpu.memory_space<vmem>>, vector<1x32x256xf32>
    %29 = vector.shape_cast %28 : vector<1x32x256xf32> to vector<32x256xf32>
    %30 = vector.shape_cast %27 : vector<32x256xf32> to vector<1x32x256xf32>
    tpu.vector_store %arg6[%c0_13, %c0_14, %c0_15], %30 {strides = array<i32>} : memref<1x32x256xf32, #tpu.memory_space<vmem>>, vector<1x32x256xf32>,
    return
  }
  func.func @transform_0(%arg0: i32, %arg1: i32) -> (i32, i32, i32) {
    %c0_i32 = arith.constant 0 : i32
    %c0_i32_0 = arith.constant 0 : i32
    return %arg0, %c0_i32, %arg1 : i32, i32, i32
  }
  func.func @transform_1(%arg0: i32, %arg1: i32) -> (i32, i32) {
    %c0_i32 = arith.constant 0 : i32
    %c0_i32_0 = arith.constant 0 : i32
    %c0_i32_1 = arith.constant 0 : i32
    return %c0_i32, %c0_i32_0 : i32, i32
  }
  func.func @transform_2(%arg0: i32, %arg1: i32) -> (i32, i32) {
    %c0_i32 = arith.constant 0 : i32
    %c0_i32_0 = arith.constant 0 : i32
    %c0_i32_1 = arith.constant 0 : i32
    return %c0_i32, %c0_i32_0 : i32, i32
  }
  func.func @transform_3(%arg0: i32, %arg1: i32) -> (i32, i32) {
    %c0_i32 = arith.constant 0 : i32
    %c0_i32_0 = arith.constant 0 : i32
    %c0_i32_1 = arith.constant 0 : i32
    return %c0_i32, %c0_i32_0 : i32, i32
  }
  func.func @transform_4(%arg0: i32, %arg1: i32) -> (i32, i32, i32) {
    %c0_i32 = arith.constant 0 : i32
    %c0_i32_0 = arith.constant 0 : i32
    return %arg0, %c0_i32, %arg1 : i32, i32, i32
  }
}

</mosaic_0001>

<bundles_post_ra>
// kernel: tpu_custom_call.1
= control target key start
LH: loop header
LB: loop body
LE: loop exit
PB: predicated region body
PF: predicated region fallthrough
CT: control target
= control target key end

     0   :  { %9 = vsyncpa [#allocation3], 0  ;;  %s867_s0 = inlined_call_operand.vmem [shape: f32[2,16,256], index: 0, kind: input, shape index: {}]   ;;  %s868_s1 = inlined_call_operand.vmem [shape: f32[16,1], index: 1, kind: input, shape index: {}]   ;;  %s869_s2 = inlined_call_operand.vmem [shape: f32[16,1], index: 2, kind: input, shape index: {}]   ;;  %s870_s3 = inlined_call_operand.vmem [shape: f32[32,16], index: 3, kind: input, shape index: {}]   ;;  %s871_s4 = inlined_call_operand.hbm [shape: f32[2,32,256], index: 4, kind: output, shape index: {}]  }
   0x1   :  { %11 = vsyncpa [#allocation3 + $0x1], 0  ;;  %s724_s15 = smov 0   ;;  %s726_s16 = smov 0  }
   0x2   :  { %s728_s17 = smov 0   ;;  %s730_s18 = smov 0  }
   0x3   :  { %s732_s19 = smov 0   ;;  %s734_s20 = smov 0  }
   0x4 LB: > { %s524_s21 = sadd.s32 4294967295, %s692_s20   ;;  %s525_s22 = sadd.s32 4294967294, %s692_s20   ;;  %s692_s20 = sphi %s734_s20, %s17_s20   ;;  %s688_s19 = sphi %s732_s19, %s878_s19   ;;  %s684_s18 = sphi %s730_s18, %s877_s18   ;;  %s680_s17 = sphi %s728_s17, %s876_s17   ;;  %s676_s16 = sphi %s726_s16, %s875_s16   ;;  %s672_s15 = sphi %s724_s15, %s874_s15  }
   0x5   : > { %s29_s23 = sadd.s32 1, %s688_s19  ;;  %s129_s24 = sadd.s32 1, %s680_s17 }
   0x6   : > { %p31_p0 = scmp.ge.s32.totalorder %s29_s23, 2  ;;  %p139_p1 = scmp.ne.s32.totalorder %s680_s17, %s676_s16 }
   0x7   : > { %p140_p2 = scmp.eq.s32.totalorder %s524_s21, 1  ;;  %p145_p3 = scmp.ne.s32.totalorder %s676_s16, %s672_s15 }
   0x8   : > { %s880_s23 = smov (%p31_p0, %s29_s23), 0  ;;  %p146_p5 = scmp.eq.s32.totalorder %s525_s22, 1 }
   0x9   : > { %p764_p4 = por %p140_p2, %p139_p1  ;;  %s124_s26 = ssub.s32 %s688_s19, %s880_s23 }
   0xa   : > { %p528_p6 = scmp.ge.s32.totalorder %s692_s20, 1  ;;  %p127_p7 = scmp.eq.s32.totalorder %s124_s26, 0 }
   0xb   : > { %p771_p8 = por %p146_p5, %p145_p3  ;;  %p186_p9 = scmp.lt.s32.totalorder %s692_s20, 3 }
   0xc   : > { %s777_s28 = scalar_select %p127_p7, %s680_s17, %s129_s24  }
   0xd   : > { %p187_p10 = pnand %p528_p6, %p186_p9 }
   0xe   : > { %v299_v0 = vld [vmem:[%s869_s2] sm:$0xff] (!%p187_p10)  ;;  %v694_v2 = vmov (!%p187_p10), 0   ;;  %v300_v3 = vld [vmem:[%s869_s2 + $0x8] sm:$0xff] (!%p187_p10)  ;;  %v695_v5 = vmov (!%p187_p10), 0.0   ;;  %p217_p11 = scmp.lt.s32.totalorder (!%p187_p10), %s684_s18, 1  ;;  %vm319_vm0 = vcmask (!%p187_p10), 130048  }
   0xf   : > { %190 = sbr.rel (%p187_p10) target bundleno = 390 (0x186), region = 36  ;;  %v283_v1 = vld [vmem:[%s868_s1] sm:$0xff] (!%p187_p10)  ;;  %609 = vset.pattern.permute.xlu1 (!%p187_p10), %v694_v2  ;;  %608 = vset.pattern.permute.xlu0 (!%p187_p10), %v694_v2  ;;  %v284_v4 = vld [vmem:[%s868_s1 + $0x8] sm:$0xff] (!%p187_p10)  ;;  %s213_s8 = sand.u32 (!%p187_p10), 1, %s676_s16  }
  0x10   : > { %303 = vperm.xlu1 (!%p187_p10), %609, %v299_v0   ;;  %287 = vperm.xlu0 (!%p187_p10), %608, %v283_v1   ;;  %s529_s9 = sshll.u32 (!%p187_p10), %s213_s8, 6  ;;  %s696_s24 = smov (!%p187_p10), [#allocation2]  }
  0x11   : > { %396 = vmatprep.mubr.f32.mxu0 (!%p187_p10), %v695_v5  ;;  %408 = vmatprep.mubr.f32.mxu1 (!%p187_p10), %v695_v5  ;;  %s215_s10 = scalar_lea.vmem (!%p187_p10), [#allocation2], %s529_s9  ;;  %s618_s26 = sshll.u32 (!%p187_p10), %s696_s24, 4  ;;  %s619_s26 = int_to_ptr.vmem [resolvable:$false] %s618_s26 }
  0x12   : > { %s620_s29 = scalar_lea.vmem (!%p187_p10), %s619_s26, 2048 }
  0x14   : > { %308 = vperm.xlu1 (!%p187_p10), %609, %v300_v3   ;;  %292 = vperm.xlu0 (!%p187_p10), %608, %v284_v4  }
  0x16   : > { %s218_s11 = scalar_select %p217_p11, %s684_s18, 1 }
  0x18   : > { %s541_s12 = sshll.u32 %s218_s11, 5  ;;  %s445_s11 = sshll.u32 %s215_s10, 4  ;;  %s814_s11 = int_to_ptr.vmem [resolvable:$true] %s445_s11 }
  0x19   : > { %s224_s21 = scalar_lea.vmem %s867_s0, %s541_s12  ;;  %s542_s12 = sshll.u32 %s684_s18, 10 }
  0x1a   : > { %v227_v6 = vld [vmem:[%s224_s21] sm:$0xff]  ;;  %v229_v7 = vld [vmem:[%s224_s21 + $0x10] sm:$0xff]  ;;  %v228_v8 = vld [vmem:[%s224_s21 + $0x8] sm:$0xff]  ;;  %s821_s18 = scalar_lea.sflag [#allocation3], %s213_s8  ;;  %s614_s22 = scalar_lea.vmem %s814_s11, 1024 }
  0x1b   : > { %v230_v9 = vld [vmem:[%s224_s21 + $0x18] sm:$0xff]  ;;  %v231_v10 = vadd.f32 %v229_v7, %v227_v6  ;;  %v245_v11 = vmul.f32 %v227_v6, %v227_v6  ;;  %v247_v12 = vmul.f32 %v229_v7, %v229_v7  ;;  %v246_v14 = vmul.f32 %v228_v8, %v228_v8  ;;  %s819_s21 = scalar_lea.hbm %s871_s4, %s542_s12  ;;  %p615_p12 = scmp.ne.s32.totalorder %s814_s11, %s614_s22 }
  0x1c   : > { %v238_v13 = vadd.f32 %v230_v9, %v228_v8  ;;  %v248_v15 = vmul.f32 %v230_v9, %v230_v9  ;;  %p621_p1 = scmp.lt.s32.totalorder %s814_s11, %s619_s26  ;;  %p622_p2 = scmp.lt.s32.totalorder %s620_s29, %s614_s22 }
  0x1d   : > { %v232_v16 = vrot.slane %v231_v10, 4  ;;  %v249_v17 = vadd.f32 %v247_v12, %v245_v11  ;;  %p616_p13 = pnand %p615_p12, %p764_p4 }
  0x1e   : > { %v239_v18 = vrot.slane %v238_v13, 4  ;;  %v256_v19 = vadd.f32 %v248_v15, %v246_v14  ;;  %v316_v15 = vld [vmem:[%s870_s3 + $0x8] sm:$0xff]  ;;  %p623_p3 = por %p622_p2, %p621_p1 }
  0x1f   : > { %v233_v20 = vadd.f32 %v232_v16, %v231_v10  ;;  %v250_v21 = vrot.slane %v249_v17, 4  ;;  %v318_v16 = vld [vmem:[%s870_s3 + $0x18] sm:$0xff]  ;;  %p617_p0 = pneg %p616_p13 }
  0x20   : > { %v240_v22 = vadd.f32 %v239_v18, %v238_v13  ;;  %v257_v23 = vrot.slane %v256_v19, 4 }
  0x21   : > { %v234_v24 = vrot.slane %v233_v20, 2  ;;  %v251_v25 = vadd.f32 %v250_v21, %v249_v17  ;;  %p624_p5 = pnand %p623_p3, %p617_p0 }
  0x22   : > { %v241_v26 = vrot.slane %v240_v22, 2  ;;  %v258_v27 = vadd.f32 %v257_v23, %v256_v19 }
  0x23   : > { %v235_v28 = vadd.f32 %v234_v24, %v233_v20  ;;  %v252_v29 = vrot.slane %v251_v25, 2 }
  0x24   : > { %v242_v30 = vadd.f32 %v241_v26, %v240_v22  ;;  %v259_v31 = vrot.slane %v258_v27, 2 }
  0x25   : > { %v236_v32 = vrot.slane %v235_v28, 1  ;;  %v253_v33 = vadd.f32 %v252_v29, %v251_v25 }
  0x26   : > { %v243_v34 = vrot.slane %v242_v30, 1  ;;  %v260_v35 = vadd.f32 %v259_v31, %v258_v27 }
  0x27   : > { %v237_v36 = vadd.f32 %v236_v32, %v235_v28  ;;  %v254_v37 = vrot.slane %v253_v33, 1 }
  0x28   : > { %v244_v38 = vadd.f32 %v243_v34, %v242_v30  ;;  %v261_v39 = vrot.slane %v260_v35, 1 }
  0x29   : > { %v255_v40 = vadd.f32 %v254_v37, %v253_v33  ;;  %v263_v41 = vmul.f32 0.0625, %v237_v36 }
  0x2a   : > { %v262_v42 = vadd.f32 %v261_v39, %v260_v35  ;;  %v264_v43 = vmul.f32 0.0625, %v244_v38 }
  0x2b   : > { %v265_v44 = vmul.f32 0.0625, %v255_v40  ;;  %v267_v45 = vmul.f32 %v263_v41, %v263_v41  ;;  %v275_v53 = vsub.f32 %v227_v6, %v263_v41  ;;  %v277_v56 = vsub.f32 %v229_v7, %v263_v41  ;;  %v315_v7 = vld [vmem:[%s870_s3] sm:$0xff] }
  0x2c   : > { %v266_v46 = vmul.f32 0.0625, %v262_v42  ;;  %v268_v47 = vmul.f32 %v264_v43, %v264_v43  ;;  %v276_v54 = vsub.f32 %v228_v8, %v264_v43  ;;  %v278_v57 = vsub.f32 %v230_v9, %v264_v43  ;;  %v317_v9 = vld [vmem:[%s870_s3 + $0x10] sm:$0xff] }
  0x2d   : > { %v269_v48 = vsub.f32 %v265_v44, %v267_v45 }
  0x2e   : > { %v270_v49 = vsub.f32 %v266_v46, %v268_v47 }
  0x2f   : > { %v271_v50 = vadd.f32 1e-05, %v269_v48 }
  0x30   : > { %v272_v51 = vadd.f32 1e-05, %v270_v49 }
  0x31   : > { %610 = vrsqrt.f32 %v271_v50 }
  0x32   : > { %612 = vrsqrt.f32 %v272_v51 }
  0x3b   : > { %v611_v52 = vpop.eup %610 }
  0x3c   : > { %v613_v55 = vpop.eup %612  ;;  %v279_v58 = vmul.f32 %v611_v52, %v275_v53  ;;  %v281_v62 = vmul.f32 %v611_v52, %v277_v56 }
  0x3d   : > { %v280_v59 = vmul.f32 %v613_v55, %v276_v54  ;;  %v282_v63 = vmul.f32 %v613_v55, %v278_v57 }
  0x8f   : > { %v304_v60 = vpop.permute.xlu1 %303  ;;  %v288_v61 = vpop.permute.xlu0 %287 }
  0x90   : > { %v295_v0 = vmul.f32 %v288_v61, %v279_v58  ;;  %v296_v1 = vmul.f32 %v288_v61, %v280_v59 }
  0x92   : > { %v312_v13 = vadd.f32 %v304_v60, %v296_v1  ;;  %v311_v6 = vadd.f32 %v304_v60, %v295_v0 }
  0x93   : > { %v293_v2 = vpop.permute.xlu0 %292  ;;  %v309_v10 = vpop.permute.xlu1 %308 }
  0x94   : > { %v297_v3 = vmul.f32 %v293_v2, %v281_v62  ;;  %v298_v4 = vmul.f32 %v293_v2, %v282_v63 }
  0x96   : > { %v313_v11 = vadd.f32 %v309_v10, %v297_v3  ;;  %v314_v12 = vadd.f32 %v309_v10, %v298_v4 }
  0x98   : > { %v543_v8 = vpack.c.bf16 %v314_v12, %v312_v13  ;;  %v545_v14 = vpack.c.bf16 %v313_v11, %v311_v6 }
  0x9a   : > { %544 = vmatprep.subr.bf16.mxu0 %v543_v8  ;;  %547 = vmatprep.subr.bf16.mxu1 %v543_v8 }
  0x9b   : > { %546 = vmatpush1.bf16.msra.mxu0 %v545_v14  ;;  %548 = vmatpush1.bf16.msra.mxu1 %v545_v14 }
  0x9e   : > { %532 = vmatmul.mubr.msk.f32.vlgmr.msra.gmra.mrb[0].mxu0 %vm319_vm0, %v315_v7  ;;  %534 = vmatmul.mubr.msk.f32.vlgmr.msra.gmra.mrb[0].mxu1 %vm319_vm0, %v317_v9 }
  0x9f   : > { %402 = vmatprep.mubr.f32.mxu0 %v695_v5  ;;  %414 = vmatprep.mubr.f32.mxu1 %v695_v5 }
  0xa2   : > { %533 = vmatmul.mubr.msk.f32.gmra.mrb[2].mxu0 %vm319_vm0, %v316_v15  ;;  %535 = vmatmul.mubr.msk.f32.gmra.mrb[2].mxu1 %vm319_vm0, %v318_v16 }
 0x171   : > { %v398_v17 = vpop.f32.mrb[0].mxu0  ;;  %v410_v18 = vpop.f32.mrb[0].mxu1 }
 0x172   : > { %421 = vst [vmem:[%s215_s10] sm:$0xff] %v398_v17  ;;  %425 = vst [vmem:[%s215_s10 + $0x20] sm:$0xff] %v410_v18  ;;  %v400_v5 = vpop.f32.mrb[1].mxu0  ;;  %v412_v19 = vpop.f32.mrb[1].mxu1 }
 0x173   : > { %422 = vst [vmem:[%s215_s10 + $0x8] sm:$0xff] %v400_v5  ;;  %426 = vst [vmem:[%s215_s10 + $0x28] sm:$0xff] %v412_v19 }
 0x175   : > { %v404_v20 = vpop.f32.mrb[2].mxu0  ;;  %v416_v21 = vpop.f32.mrb[2].mxu1 }
 0x176   : > { %423 = vst [vmem:[%s215_s10 + $0x10] sm:$0xff] %v404_v20  ;;  %427 = vst [vmem:[%s215_s10 + $0x30] sm:$0xff] %v416_v21  ;;  %v406_v22 = vpop.f32.mrb[3].mxu0  ;;  %v418_v23 = vpop.f32.mrb[3].mxu1 }
 0x177   : > { %424 = vst [vmem:[%s215_s10 + $0x18] sm:$0xff] %v406_v22  ;;  %428 = vst [vmem:[%s215_s10 + $0x38] sm:$0xff] %v418_v23 }
 0x178   : > { %627 = shalt.err (!%p624_p5)
}
 0x179   : > { %s628_s30 = scalar_lea.hbm %s819_s21, 1024  ;;  %s632_s7 = scalar_lea.hbm %s871_s4, 2048 }
 0x17a   : > { %p629_p6 = scmp.ne.s32.totalorder %s819_s21, %s628_s30  ;;  %p633_p10 = scmp.lt.u32.totalorder %s819_s21, %s871_s4 }
 0x17b   : > { %p634_p11 = scmp.lt.u32.totalorder %s632_s7, %s628_s30  ;;  %p636_p13 = scmp.lt.u32.totalorder %s628_s30, %s819_s21 }
 0x17c   : > { %p630_p7 = pnand %p629_p6, %p764_p4 }
 0x17d   : > { %p635_p12 = por %p634_p11, %p633_p10 }
 0x17e   : > { %p631_p9 = pneg %p630_p7 }
 0x17f   : > { %p637_p0 = por %p636_p13, %p635_p12 }
 0x181   : > { %p638_p1 = pnand %p637_p0, %p631_p9 }
 0x183   : > { %641 = shalt.err (!%p638_p1)
}
 0x184   : > { %s697_s10 = smov 256   ;;  %s698_s12 = smov 16  }
 0x185   : > { %549 = dma.vmem_to_hbm [thread:$0]  (%p764_p4), %s814_s11, 1024, %s819_s21, %s821_s18, %s697_s10, %s697_s10, %s698_s12  }
 0x186 PF: > { %p555_p2 = scmp.ge.s32.totalorder %s692_s20, 2  ;;  %s460_s13 = sand.u32 1, %s672_s15  }
 0x187   : > { %s461_s14 = scalar_lea.sflag [#allocation3], %s460_s13 }
 0x188   : > { %p552_p3 = pnand %p555_p2, %p771_p8 }
 0x18a   : > { %667 = dma.done.wait (!%p552_p3), %s461_s14, 1024  }
 0x18b   : > { %669 = vsyncadd (!%p552_p3), %s461_s14, 4294966272  ;;  %s17_s20 = sadd.s32 1, %s692_s20   ;;  %s874_s15 = smov %s676_s16 }
 0x18c   : > { %p14_p5 = scmp.ge.s32.totalorder %s17_s20, 4   ;;  %s875_s16 = smov %s680_s17 }
 0x18d   : > { %s876_s17 = smov %s777_s28  ;;  %s877_s18 = smov %s688_s19 }
 0x18e   : > { %s878_s19 = smov %s880_s23  ;;  %16 = sbr.rel (!%p14_p5) target bundleno = 4 (0x4), region = 71 }
 0x195   :  { %466 = vsyncpa [#allocation3], 1 }
 0x196   :  { %468 = vsyncpa [#allocation3 + $0x1], 1 }

</bundles_post_ra>
